<compile_context>
chip_gen: v7x
topology: tpu7x:2x2x1
jax: 0.10.0
libtpu: 0.0.40
codegen_flags: <defaults>
</compile_context>

<pallas_src>
import jax
import jax.numpy as jnp
from jax.experimental import pallas as pl
from jax.experimental.pallas import tpu as pltpu


def _pick_tile_b(B):
    """Largest divisor of B that is <= 8 and keeps B // tile_b >= 2 (v7x megacore)."""
    if B <= 1:
        return 1
    best = 1
    for t in range(1, min(8, B) + 1):
        if B % t == 0 and B // t >= 2:
            best = t
    return best


def _pick_tile_l(L, C, tile_b, dtype, byte_cap):
    """Choose the L (lane-axis) tile purely by bytes.

    Returns full L when it fits the byte budget, otherwise the largest multiple of
    128 lanes that fits (preferring an exact divisor of L, so the tail needs no mask,
    as long as that divisor is not much smaller than the budgeted tile).
    """
    itemsize = jnp.dtype(dtype).itemsize
    col_bytes = max(1, tile_b * C * itemsize)        # bytes per lane column of a block
    max_lanes = max(1, byte_cap // col_bytes)
    if L <= max_lanes or L <= 128:
        return L                                     # one block spans all of L
    tl = max(128, (max_lanes // 128) * 128)
    # Prefer an exact divisor of L (avoids the masked tail) if it is >= tl // 2.
    d = tl
    while d >= max(128, tl // 2):
        if L % d == 0:
            return d
        d -= 128
    return tl                                        # ragged tail -> in-kernel mask


def _make_kernel(L, tile_l, tb, needs_mask):
    inv_l = 1.0 / float(L)

    def kernel(x_ref, w1t_ref, w2t_ref, o_ref, sum_ref, max_ref):
        l = pl.program_id(1)

        @pl.when(l == 0)
        def _init():
            sum_ref[...] = jnp.zeros_like(sum_ref)
            max_ref[...] = jnp.full_like(max_ref, -jnp.inf)

        # x block: (tb, C, tile_l) -- native layout, L on the lane axis.
        x = x_ref[...].astype(jnp.float32)
        if needs_mask:
            # cdiv grid: mask out-of-range lanes (0 for sum, -inf for max).
            start = l * tile_l
            lane = jax.lax.broadcasted_iota(jnp.int32, x.shape, dimension=2)
            valid = (start + lane) < L
            xs = jnp.where(valid, x, 0.0)
            xm = jnp.where(valid, x, -jnp.inf)
        else:
            xs = x
            xm = x
        sum_ref[...] = sum_ref[...] + jnp.sum(xs, axis=-1)
        max_ref[...] = jnp.maximum(max_ref[...], jnp.max(xm, axis=-1))

        @pl.when(l == pl.num_programs(1) - 1)
        def _finalize():
            avg = sum_ref[...] * inv_l                              # sum * (1/L)
            pooled = jnp.concatenate([avg, max_ref[...]], axis=0)   # (2*tb, C)
            w1t = w1t_ref[...].astype(jnp.float32)                  # (C, hidden)
            w2t = w2t_ref[...].astype(jnp.float32)                  # (hidden, C)
            # Fused shared MLP: one pass over both pooled vectors (avg & max).
            h = jnp.maximum(
                jnp.dot(pooled, w1t, preferred_element_type=jnp.float32), 0.0)
            y = jnp.dot(h, w2t, preferred_element_type=jnp.float32)  # (2*tb, C)
            out = y[:tb, :] + y[tb:, :]                              # (tb, C)
            o_ref[...] = jax.nn.sigmoid(out).astype(o_ref.dtype)[:, :, None]

    return kernel


def prepare_channel_attention_params(w1, w2):
    """One-time setup: pre-transpose Conv1d (k=1) weights so the kernel does plain
    row-major matmuls. w1: (C//r, C), w2: (C, C//r) -> w1t: (C, C//r), w2t: (C//r, C)."""
    return jnp.asarray(w1).T, jnp.asarray(w2).T


def channel_attention(x, w1t, w2t, *, tile_l=None, tile_b=None,
                      block_bytes=8 * 1024 * 1024):
    """x: (B, C, L) (native layout); w1t: (C, hidden); w2t: (hidden, C).
    Returns sigmoid(fc(avg_pool(x)) + fc(max_pool(x))) of shape (B, C, 1)."""
    B, C, L = x.shape
    hidden = w1t.shape[1]
    assert w1t.shape == (C, hidden) and w2t.shape == (hidden, C)

    if tile_b is None:
        tile_b = _pick_tile_b(B)
    assert B % tile_b == 0

    if tile_l is None:
        tile_l = _pick_tile_l(L, C, tile_b, x.dtype, block_bytes)
    assert tile_l == L or tile_l % 128 == 0, "tile_l must be a multiple of 128 or == L"
    assert tile_l <= L

    num_l = pl.cdiv(L, tile_l)
    needs_mask = (L % tile_l) != 0
    grid = (B // tile_b, num_l)
    kernel = _make_kernel(L=L, tile_l=tile_l, tb=tile_b, needs_mask=needs_mask)

    itemsize = jnp.dtype(x.dtype).itemsize
    cost = pl.CostEstimate(
        flops=int(2 * B * L * C + 8 * B * C * hidden + 4 * B * C),
        transcendentals=int(B * C),
        bytes_accessed=int(x.size * itemsize
                           + w1t.size * jnp.dtype(w1t.dtype).itemsize
                           + w2t.size * jnp.dtype(w2t.dtype).itemsize
                           + B * C * itemsize),
    )

    out = pl.pallas_call(
        kernel,
        out_shape=jax.ShapeDtypeStruct((B, C, 1), x.dtype),
        grid_spec=pltpu.PrefetchScalarGridSpec(
            num_scalar_prefetch=0,
            grid=grid,
            in_specs=[
                # x streamed in native (B, C, L) layout: no wrapper transpose.
                pl.BlockSpec((tile_b, C, tile_l), lambda b, l: (b, 0, l)),
                pl.BlockSpec((C, hidden), lambda b, l: (0, 0)),
                pl.BlockSpec((hidden, C), lambda b, l: (0, 0)),
            ],
            out_specs=pl.BlockSpec((tile_b, C, 1), lambda b, l: (b, 0, 0)),
            scratch_shapes=[
                pltpu.VMEM((tile_b, C), jnp.float32),  # running sum
                pltpu.VMEM((tile_b, C), jnp.float32),  # running max
            ],
        ),
        compiler_params=pltpu.CompilerParams(
            dimension_semantics=("parallel", "arbitrary"),
            vmem_limit_bytes=48 * 1024 * 1024),
        cost_estimate=cost,
    )(x, w1t, w2t)

    return out  # (B, C, 1), matches the PyTorch module output.


def reference_channel_attention(x, w1, w2):
    """Pure-JAX reference mirroring the PyTorch forward exactly (f32)."""
    x = x.astype(jnp.float32)
    avg = jnp.mean(x, axis=-1, keepdims=True)  # (B, C, 1)
    mx = jnp.max(x, axis=-1, keepdims=True)    # (B, C, 1)

    def fc(p):  # p: (B, C, 1)
        h = jnp.einsum('oc,bcl->bol', w1.astype(jnp.float32), p)
        h = jnp.maximum(h, 0.0)
        return jnp.einsum('oc,bcl->bol', w2.astype(jnp.float32), h)

    return jax.nn.sigmoid(fc(avg) + fc(mx))


if __name__ == "__main__":
    key = jax.random.PRNGKey(0)
    kx, kw1, kw2, kx2, kx3 = jax.random.split(key, 5)

    B, C, reduction = 2, 64, 16
    hidden = C // reduction  # 4

    w1 = jax.random.normal(kw1, (hidden, C), dtype=jnp.float32) * 0.1
    w2 = jax.random.normal(kw2, (C, hidden), dtype=jnp.float32) * 0.1
    # Weight transposes hoisted out of the hot path (done once at setup).
    w1t, w2t = prepare_channel_attention_params(w1, w2)

    # Test 1: tiny L -> single full-L block (auto tile selection).
    L = 16
    x = jax.random.normal(kx, (B, C, L), dtype=jnp.float32)
    out = jax.block_until_ready(channel_attention(x, w1t, w2t))
    ref = reference_channel_attention(x, w1, w2)
    assert out.shape == (B, C, 1), out.shape
    assert jnp.allclose(out, ref, atol=2e-5, rtol=2e-5), (
        float(jnp.max(jnp.abs(out - ref))))

    # Test 2: L = 256 with an explicit 128-lane tile -> multi-step accumulators.
    L2 = 256
    x2 = jax.random.normal(kx2, (B, C, L2), dtype=jnp.float32)
    out2 = jax.block_until_ready(channel_attention(x2, w1t, w2t, tile_l=128))
    ref2 = reference_channel_attention(x2, w1, w2)
    assert jnp.allclose(out2, ref2, atol=2e-5, rtol=2e-5), (
        float(jnp.max(jnp.abs(out2 - ref2))))

    # Test 3: ragged L = 200 with tile_l=128 -> cdiv grid + masked last block.
    L3 = 200
    x3 = jax.random.normal(kx3, (B, C, L3), dtype=jnp.float32)
    out3 = jax.block_until_ready(channel_attention(x3, w1t, w2t, tile_l=128))
    ref3 = reference_channel_attention(x3, w1, w2)
    assert jnp.allclose(out3, ref3, atol=2e-5, rtol=2e-5), (
        float(jnp.max(jnp.abs(out3 - ref3))))

    # Test 4: bf16 activations + weights (halved HBM traffic); f32 math in-kernel.
    xb = x2.astype(jnp.bfloat16)
    w1b = w1t.astype(jnp.bfloat16)
    w2b = w2t.astype(jnp.bfloat16)
    outb = jax.block_until_ready(channel_attention(xb, w1b, w2b, tile_l=128))
    refb = reference_channel_attention(xb, w1, w2)
    assert jnp.allclose(outb.astype(jnp.float32), refb, atol=2e-2, rtol=2e-2), (
        float(jnp.max(jnp.abs(outb.astype(jnp.float32) - refb))))

    print("KERNEL_OK")
</pallas_src>

<mosaic_0001>
module attributes {stable_mosaic.version = 11 : i64} {
  func.func @kernel(%arg0: i32, %arg1: i32, %arg2: memref<1x64x16xf32, #tpu.memory_space<vmem>>, %arg3: memref<64x4xf32, #tpu.memory_space<vmem>>, %arg4: memref<4x64xf32, #tpu.memory_space<vmem>>, %arg5: memref<1x64x1xf32, #tpu.memory_space<vmem>>, %arg6: memref<1x64xf32, #tpu.memory_space<vmem>>, %arg7: memref<1x64xf32, #tpu.memory_space<vmem>>) attributes {dimension_semantics = [#tpu.dimension_semantics<parallel>, #tpu.dimension_semantics<arbitrary>], iteration_bounds = array<i64: 2, 1>, scalar_prefetch = 0 : i64, scratch_operands = 2 : i64, tpu.core_type = #tpu.core_type<tc>, window_params = [{transform_indices = @transform_0, window_bounds = array<i64: 1, 64, 16>}, {pipeline_mode = #tpu.pipeline_mode<synchronous>, transform_indices = @transform_1, window_bounds = array<i64: 64, 4>}, {pipeline_mode = #tpu.pipeline_mode<synchronous>, transform_indices = @transform_2, window_bounds = array<i64: 4, 64>}, {transform_indices = @transform_3, window_bounds = array<i64: 1, 64, 1>}]} {
    %c0_i32 = arith.constant 0 : i32
    %0 = arith.cmpi eq, %arg1, %c0_i32 : i32
    %1 = arith.extui %0 : i1 to i32
    %c0_i32_0 = arith.constant 0 : i32
    %2 = arith.cmpi ne, %1, %c0_i32_0 : i32
    scf.if %2 {
      %cst_14 = arith.constant 0.000000e+00 : f32
      %15 = vector.broadcast %cst_14 : f32 to vector<1x64xf32>
      %c0_15 = arith.constant 0 : index
      %c0_16 = arith.constant 0 : index
      %16 = vector.load %arg6[%c0_15, %c0_16] : memref<1x64xf32, #tpu.memory_space<vmem>>, vector<1x64xf32>
      tpu.vector_store %arg6[%c0_15, %c0_16], %15 {strides = array<i32>} : memref<1x64xf32, #tpu.memory_space<vmem>>, vector<1x64xf32>,
      %cst_17 = arith.constant 0xFF800000 : f32
      %17 = vector.broadcast %cst_17 : f32 to vector<1x64xf32>
      %c0_18 = arith.constant 0 : index
      %c0_19 = arith.constant 0 : index
      %18 = vector.load %arg7[%c0_18, %c0_19] : memref<1x64xf32, #tpu.memory_space<vmem>>, vector<1x64xf32>
      tpu.vector_store %arg7[%c0_18, %c0_19], %17 {strides = array<i32>} : memref<1x64xf32, #tpu.memory_space<vmem>>, vector<1x64xf32>,
    } else {
    }
    %c0 = arith.constant 0 : index
    %c0_1 = arith.constant 0 : index
    %c0_2 = arith.constant 0 : index
    %3 = vector.load %arg2[%c0, %c0_1, %c0_2] : memref<1x64x16xf32, #tpu.memory_space<vmem>>, vector<1x64x16xf32>
    %c0_3 = arith.constant 0 : index
    %c0_4 = arith.constant 0 : index
    %4 = vector.load %arg6[%c0_3, %c0_4] : memref<1x64xf32, #tpu.memory_space<vmem>>, vector<1x64xf32>
    %cst = arith.constant dense<0.000000e+00> : vector<1x64xf32>
    %5 = vector.multi_reduction <add>, %3, %cst [2] : vector<1x64x16xf32> to vector<1x64xf32>
    %6 = arith.addf %4, %5 : vector<1x64xf32>
    %c0_5 = arith.constant 0 : index
    %c0_6 = arith.constant 0 : index
    %7 = vector.load %arg6[%c0_5, %c0_6] : memref<1x64xf32, #tpu.memory_space<vmem>>, vector<1x64xf32>
    tpu.vector_store %arg6[%c0_5, %c0_6], %6 {strides = array<i32>} : memref<1x64xf32, #tpu.memory_space<vmem>>, vector<1x64xf32>,
    %c0_7 = arith.constant 0 : index
    %c0_8 = arith.constant 0 : index
    %8 = vector.load %arg7[%c0_7, %c0_8] : memref<1x64xf32, #tpu.memory_space<vmem>>, vector<1x64xf32>
    %cst_9 = arith.constant dense<0xFF800000> : vector<1x64xf32>
    %9 = vector.multi_reduction <maximumf>, %3, %cst_9 [2] : vector<1x64x16xf32> to vector<1x64xf32>
    %10 = arith.maximumf %8, %9 : vector<1x64xf32>
    %c0_10 = arith.constant 0 : index
    %c0_11 = arith.constant 0 : index
    %11 = vector.load %arg7[%c0_10, %c0_11] : memref<1x64xf32, #tpu.memory_space<vmem>>, vector<1x64xf32>
    tpu.vector_store %arg7[%c0_10, %c0_11], %10 {strides = array<i32>} : memref<1x64xf32, #tpu.memory_space<vmem>>, vector<1x64xf32>,
    %c0_i32_12 = arith.constant 0 : i32
    %12 = arith.cmpi eq, %arg1, %c0_i32_12 : i32
    %13 = arith.extui %12 : i1 to i32
    %c0_i32_13 = arith.constant 0 : i32
    %14 = arith.cmpi ne, %13, %c0_i32_13 : i32
    scf.if %14 {
      %c0_14 = arith.constant 0 : index
      %c0_15 = arith.constant 0 : index
      %15 = vector.load %arg6[%c0_14, %c0_15] : memref<1x64xf32, #tpu.memory_space<vmem>>, vector<1x64xf32>
      %cst_16 = arith.constant 6.250000e-02 : f32
      %16 = vector.broadcast %cst_16 : f32 to vector<1x64xf32>
      %17 = arith.mulf %15, %16 : vector<1x64xf32>
      %c0_17 = arith.constant 0 : index
      %c0_18 = arith.constant 0 : index
      %18 = vector.load %arg7[%c0_17, %c0_18] : memref<1x64xf32, #tpu.memory_space<vmem>>, vector<1x64xf32>
      %19 = tpu.concatenate %17, %18 in 0 : vector<1x64xf32>, vector<1x64xf32> -> vector<2x64xf32>
      %c0_19 = arith.constant 0 : index
      %c0_20 = arith.constant 0 : index
      %20 = vector.load %arg3[%c0_19, %c0_20] : memref<64x4xf32, #tpu.memory_space<vmem>>, vector<64x4xf32>
      %c0_21 = arith.constant 0 : index
      %c0_22 = arith.constant 0 : index
      %21 = vector.load %arg4[%c0_21, %c0_22] : memref<4x64xf32, #tpu.memory_space<vmem>>, vector<4x64xf32>
      %cst_23 = arith.constant dense<0.000000e+00> : vector<2x4xf32>
      %22 = tpu.matmul %19, %20, %cst_23 {dimension_numbers = #tpu.dot_dimension_numbers<[1], [0], [0], [1], [0, 0, 1, 1], [], []>} : vector<2x64xf32>, vector<64x4xf32>, vector<2x4xf32> -> vector<2x4xf32>
      %cst_24 = arith.constant 0.000000e+00 : f32
      %23 = vector.broadcast %cst_24 : f32 to vector<2x4xf32>
      %24 = arith.maximumf %22, %23 : vector<2x4xf32>
      %cst_25 = arith.constant dense<0.000000e+00> : vector<2x64xf32>
      %25 = tpu.matmul %24, %21, %cst_25 {dimension_numbers = #tpu.dot_dimension_numbers<[1], [0], [0], [1], [0, 0, 1, 1], [], []>} : vector<2x4xf32>, vector<4x64xf32>, vector<2x64xf32> -> vector<2x64xf32>
      %26 = vector.extract_strided_slice %25 {offsets = [0, 0], sizes = [1, 64], strides = [1, 1]} : vector<2x64xf32> to vector<1x64xf32>
      %27 = vector.extract_strided_slice %25 {offsets = [1, 0], sizes = [1, 64], strides = [1, 1]} : vector<2x64xf32> to vector<1x64xf32>
      %28 = arith.addf %26, %27 : vector<1x64xf32>
      %29 = arith.negf %28 : vector<1x64xf32>
      %30 = math.exp %29 : vector<1x64xf32>
      %cst_26 = arith.constant 1.000000e+00 : f32
      %31 = vector.broadcast %cst_26 : f32 to vector<1x64xf32>
      %32 = arith.addf %31, %30 : vector<1x64xf32>
      %33 = arith.divf %31, %32 : vector<1x64xf32>
      %34 = vector.shape_cast %33 : vector<1x64xf32> to vector<1x64x1xf32>
      %c0_27 = arith.constant 0 : index
      %c0_28 = arith.constant 0 : index
      %c0_29 = arith.constant 0 : index
      %35 = vector.load %arg5[%c0_27, %c0_28, %c0_29] : memref<1x64x1xf32, #tpu.memory_space<vmem>>, vector<1x64x1xf32>
      tpu.vector_store %arg5[%c0_27, %c0_28, %c0_29], %34 {strides = array<i32>} : memref<1x64x1xf32, #tpu.memory_space<vmem>>, vector<1x64x1xf32>,
    } else {
    }
    return
  }
  func.func @transform_0(%arg0: i32, %arg1: i32) -> (i32, i32, i32) {
    %c0_i32 = arith.constant 0 : i32
    %c0_i32_0 = arith.constant 0 : i32
    return %arg0, %c0_i32, %arg1 : i32, i32, i32
  }
  func.func @transform_1(%arg0: i32, %arg1: i32) -> (i32, i32) {
    %c0_i32 = arith.constant 0 : i32
    %c0_i32_0 = arith.constant 0 : i32
    %c0_i32_1 = arith.constant 0 : i32
    return %c0_i32, %c0_i32_0 : i32, i32
  }
  func.func @transform_2(%arg0: i32, %arg1: i32) -> (i32, i32) {
    %c0_i32 = arith.constant 0 : i32
    %c0_i32_0 = arith.constant 0 : i32
    %c0_i32_1 = arith.constant 0 : i32
    return %c0_i32, %c0_i32_0 : i32, i32
  }
  func.func @transform_3(%arg0: i32, %arg1: i32) -> (i32, i32, i32) {
    %c0_i32 = arith.constant 0 : i32
    %c0_i32_0 = arith.constant 0 : i32
    %c0_i32_1 = arith.constant 0 : i32
    return %arg0, %c0_i32, %c0_i32_0 : i32, i32, i32
  }
}

</mosaic_0001>

<bundles_post_ra>
// kernel: tpu_custom_call.1
= control target key start
LH: loop header
LB: loop body
LE: loop exit
PB: predicated region body
PF: predicated region fallthrough
CT: control target
= control target key end

     0   :  { %s2199_s12 = smov 0   ;;  %s2201_s13 = smov 0   ;;  %s2616_s0 = inlined_call_operand.vmem [shape: f32[2,64,16], index: 0, kind: input, shape index: {}]   ;;  %s2617_s1 = inlined_call_operand.vmem [shape: f32[64,4], index: 1, kind: input, shape index: {}]   ;;  %s2618_s2 = inlined_call_operand.vmem [shape: f32[4,64], index: 2, kind: input, shape index: {}]   ;;  %s2619_s3 = inlined_call_operand.vmem [shape: f32[2,64,1], index: 3, kind: output, shape index: {}]  }
   0x1   :  { %s2203_s14 = smov 0  }
   0x2 LB: > { %s25_s15 = sadd.s32 1, %s2167_s13  ;;  %p2052_p0 = scmp.ge.s32.totalorder %s2171_s14, 1  ;;  %s2171_s14 = sphi %s2203_s14, %s13_s14   ;;  %s2167_s13 = sphi %s2201_s13, %s2621_s13   ;;  %s2163_s12 = sphi %s2199_s12, %s2620_s12  }
   0x3   : > { %p27_p1 = scmp.ge.s32.totalorder %s25_s15, 2  ;;  %p154_p2 = scmp.lt.s32.totalorder %s2171_s14, 3 }
   0x5   : > { %s2623_s15 = smov (%p27_p1, %s25_s15), 0  ;;  %p155_p3 = pnand %p2052_p0, %p154_p2 }
   0x6   : > { %p181_p4 = scmp.lt.s32.totalorder (!%p155_p3), %s2163_s12, 1  ;;  %vm210_vm0 = vcmask (!%p155_p3), 130048   ;;  %v2173_v22 = vmov (!%p155_p3), 0   ;;  %v243_v25 = vlaneseq (!%p155_p3)  ;;  %v2174_v26 = vmov (!%p155_p3), 1966171168  }
   0x7   : > { %158 = sbr.rel (%p155_p3) target bundleno = 985 (0x3d9), region = 32  ;;  %2143 = vset.pattern.permute.xlu0 (!%p155_p3), %v2173_v22  ;;  %2144 = vset.pattern.permute.xlu1 (!%p155_p3), %v2173_v22  ;;  %v504_v27 = vunpack.c.l.s4 (!%p155_p3), %v2174_v26  ;;  %vm198_vm1 = vcmask (!%p155_p3), 516096   ;;  %vm2178_vm2 = vmmov (!%p155_p3), 0   ;;  %vm926_vm3 = vcmask (!%p155_p3), 130112  }
   0x8   : > { %v2252_v28 = vshrl.u32 (!%p155_p3), %v243_v25, 7  ;;  %vm933_vm4 = vcmask (!%p155_p3), 195712   ;;  %vm940_vm5 = vcmask (!%p155_p3), 261312   ;;  %vm947_vm6 = vcmask (!%p155_p3), 326912  }
   0x9   : > { %v505_v29 = vunpack.c.0.s8 (!%p155_p3), %v504_v27  ;;  %vm954_vm7 = vcmask (!%p155_p3), 392512   ;;  %vm961_vm8 = vcmask (!%p155_p3), 458112   ;;  %vm968_vm9 = vcmask (!%p155_p3), 523712  }
   0xa   : > { %v2255_v30 = vsub.s32 (!%p155_p3), 0, %v2252_v28  ;;  %v2258_v31 = vsub.s32 (!%p155_p3), 1, %v2252_v28  ;;  %v2261_v32 = vsub.s32 (!%p155_p3), 2, %v2252_v28  ;;  %v2264_v33 = vsub.s32 (!%p155_p3), 3, %v2252_v28 }
   0xb   : > { %v2267_v34 = vsub.s32 (!%p155_p3), 4, %v2252_v28  ;;  %v2270_v35 = vsub.s32 (!%p155_p3), 5, %v2252_v28  ;;  %v2273_v36 = vsub.s32 (!%p155_p3), 6, %v2252_v28  ;;  %v2276_v37 = vsub.s32 (!%p155_p3), 7, %v2252_v28 }
   0xc   : > { %v2279_v40 = vsub.s32 (!%p155_p3), %v505_v29, %v2252_v28  ;;  %vm1761_vm10 = vcmask (!%p155_p3), 1040384   ;;  %vm1772_vm11 = vcmask (!%p155_p3), 523264   ;;  %vm1851_vm12 = vcmask (!%p155_p3), 1043456  }
   0xd   : > { %vm1847_vm13 = vcmask (!%p155_p3), 31744   ;;  %vm1970_vm14 = vcmask (!%p155_p3), 7168  }
   0xe   : > { %s2625_s12 = smov (!%p181_p4, %s2163_s12), 1 }
   0xf   : > { %s2064_s16 = sshll.u32 %s2625_s12, 6 }
  0x10   : > { %s2225_s19 = scalar_lea.vmem %s2616_s0, %s2064_s16  ;;  %s193_s18 = scalar_lea.vmem %s2619_s3, %s2064_s16 }
  0x11   : > { %v201_v0 = vld [vmem:[%s2225_s19] sm:$0xff]  ;;  %v203_v1 = vld [vmem:[%s2225_s19 + $0x10] sm:$0xff]  ;;  %v202_v2 = vld [vmem:[%s2225_s19 + $0x8] sm:$0xff] }
  0x12   : > { %v211_v3 = vsel %vm210_vm0, %v201_v0, 0.0  ;;  %v217_v4 = vsel %vm210_vm0, %v203_v1, 0.0  ;;  %v204_v5 = vld [vmem:[%s2225_s19 + $0x18] sm:$0xff]  ;;  %v214_v6 = vsel %vm210_vm0, %v202_v2, 0.0  ;;  %v992_v8 = vsel %vm210_vm0, %v202_v2, -inf  ;;  %v205_v10 = vld [vmem:[%s2225_s19 + $0x20] sm:$0xff] }
  0x13   : > { %212 = vadd.xlane.f32.xlu0 %v211_v3  ;;  %218 = vadd.xlane.f32.xlu1 %v217_v4  ;;  %v220_v7 = vsel %vm210_vm0, %v204_v5, 0.0  ;;  %v989_v9 = vsel %vm210_vm0, %v201_v0, -inf  ;;  %v995_v11 = vsel %vm210_vm0, %v203_v1, -inf  ;;  %v223_v12 = vsel %vm210_vm0, %v205_v10, 0.0  ;;  %v206_v13 = vld [vmem:[%s2225_s19 + $0x28] sm:$0xff]  ;;  %v207_v16 = vld [vmem:[%s2225_s19 + $0x30] sm:$0xff] }
  0x14   : > { %v998_v14 = vsel %vm210_vm0, %v204_v5, -inf  ;;  %v226_v15 = vsel %vm210_vm0, %v206_v13, 0.0  ;;  %v1001_v17 = vsel %vm210_vm0, %v205_v10, -inf  ;;  %v229_v18 = vsel %vm210_vm0, %v207_v16, 0.0  ;;  %v208_v19 = vld [vmem:[%s2225_s19 + $0x38] sm:$0xff] }
  0x15   : > { %v1004_v20 = vsel %vm210_vm0, %v206_v13, -inf  ;;  %v232_v21 = vsel %vm210_vm0, %v208_v19, 0.0  ;;  %v1010_v23 = vsel %vm210_vm0, %v208_v19, -inf  ;;  %v1007_v24 = vsel %vm210_vm0, %v207_v16, -inf }
  0x17   : > { %215 = vadd.xlane.f32.xlu0 %v214_v6  ;;  %221 = vadd.xlane.f32.xlu1 %v220_v7 }
  0x1b   : > { %993 = vmax.xlane.f32.xlu1 %v992_v8  ;;  %990 = vmax.xlane.f32.xlu0 %v989_v9 }
  0x1f   : > { %996 = vmax.xlane.f32.xlu1 %v995_v11  ;;  %224 = vadd.xlane.f32.xlu0 %v223_v12 }
  0x23   : > { %999 = vmax.xlane.f32.xlu1 %v998_v14  ;;  %227 = vadd.xlane.f32.xlu0 %v226_v15 }
  0x27   : > { %1002 = vmax.xlane.f32.xlu1 %v1001_v17  ;;  %230 = vadd.xlane.f32.xlu0 %v229_v18 }
  0x2b   : > { %1005 = vmax.xlane.f32.xlu1 %v1004_v20  ;;  %233 = vadd.xlane.f32.xlu0 %v232_v21 }
  0x2f   : > { %1011 = vmax.xlane.f32.xlu1 %v1010_v23  ;;  %1008 = vmax.xlane.f32.xlu0 %v1007_v24 }
  0xa0   : > { %v213_v38 = vpop.xlane.xlu0 %212  ;;  %v219_v39 = vpop.xlane.xlu1 %218 }
  0xa1   : > { %v246_v41 = vrot.slane %v213_v38, %v2255_v30  ;;  %v250_v42 = vrot.slane %v213_v38, %v2258_v31  ;;  %v254_v43 = vrot.slane %v213_v38, %v2261_v32  ;;  %v258_v44 = vrot.slane %v213_v38, %v2264_v33 }
  0xa2   : > { %v262_v45 = vrot.slane %v213_v38, %v2267_v34  ;;  %v266_v46 = vrot.slane %v213_v38, %v2270_v35  ;;  %v270_v47 = vrot.slane %v213_v38, %v2273_v36  ;;  %v274_v48 = vrot.slane %v213_v38, %v2276_v37 }
  0xa3   : > { %v499_v49 = vcombine.low %v246_v41, %v250_v42  ;;  %v500_v50 = vcombine.low %v254_v43, %v258_v44  ;;  %v310_v51 = vrot.slane %v219_v39, %v2255_v30  ;;  %v314_v52 = vrot.slane %v219_v39, %v2258_v31 }
  0xa4   : > { %v216_v53 = vpop.xlane.xlu0 %215  ;;  %v2291_v54 = vpop.xlane.xlu1 %221  ;;  %v501_v55 = vcombine.low %v262_v45, %v266_v46  ;;  %v502_v56 = vcombine.low %v270_v47, %v274_v48  ;;  %v318_v57 = vrot.slane %v219_v39, %v2261_v32  ;;  %v322_v58 = vrot.slane %v219_v39, %v2264_v33 }
  0xa5   : > { %v509_v59 = vrot.slane %v499_v49, %v2279_v40  ;;  %v516_v60 = vrot.slane %v500_v50, %v2279_v40  ;;  %v278_v61 = vrot.slane %v216_v53, %v2255_v30  ;;  %v282_v62 = vrot.slane %v216_v53, %v2258_v31 }
  0xa6   : > { %v523_v63 = vrot.slane %v501_v55, %v2279_v40  ;;  %v530_v0 = vrot.slane %v502_v56, %v2279_v40  ;;  %v286_v1 = vrot.slane %v216_v53, %v2261_v32  ;;  %v290_v2 = vrot.slane %v216_v53, %v2264_v33 }
  0xa7   : > { %v531_v3 = vcombine.low %v509_v59, %v516_v60  ;;  %v294_v4 = vrot.slane %v216_v53, %v2267_v34  ;;  %v298_v5 = vrot.slane %v216_v53, %v2270_v35  ;;  %v302_v6 = vrot.slane %v216_v53, %v2273_v36 }
  0xa8   : > { %v2306_v7 = vpop.xlane.xlu1 %993  ;;  %v532_v8 = vcombine.low %v523_v63, %v530_v0  ;;  %v306_v9 = vrot.slane %v216_v53, %v2276_v37  ;;  %v548_v10 = vcombine.low %v278_v61, %v282_v62  ;;  %v549_v11 = vcombine.low %v286_v1, %v290_v2 }
  0xa9   : > { %v539_v12 = vrot.slane %v531_v3, %v2279_v40  ;;  %v550_v13 = vcombine.low %v294_v4, %v298_v5  ;;  %v326_v14 = vrot.slane %v219_v39, %v2267_v34  ;;  %v330_v15 = vrot.slane %v219_v39, %v2270_v35 }
  0xaa   : > { %v546_v16 = vrot.slane %v532_v8, %v2279_v40  ;;  %v551_v17 = vcombine.low %v302_v6, %v306_v9  ;;  %v558_v18 = vrot.slane %v548_v10, %v2279_v40  ;;  %v565_v19 = vrot.slane %v549_v11, %v2279_v40 }
  0xab   : > { %v572_v20 = vrot.slane %v550_v13, %v2279_v40  ;;  %v334_v21 = vrot.slane %v219_v39, %v2273_v36  ;;  %v338_v22 = vrot.slane %v219_v39, %v2276_v37  ;;  %v597_v23 = vcombine.low %v310_v51, %v314_v52  ;;  %v991_v52 = vpop.xlane.xlu0 %990 }
  0xac   : > { %v547_v24 = vcombine.low %v539_v12, %v546_v16  ;;  %v579_v26 = vrot.slane %v551_v17, %v2279_v40  ;;  %v580_v27 = vcombine.low %v558_v18, %v565_v19  ;;  %v598_v29 = vcombine.low %v318_v57, %v322_v58  ;;  %v2322_v44 = vpop.xlane.xlu1 %996 }
  0xad   : > { %v599_v38 = vcombine.low %v326_v14, %v330_v15  ;;  %v600_v41 = vcombine.low %v334_v21, %v338_v22  ;;  %v607_v42 = vrot.slane %v597_v23, %v2279_v40  ;;  %v342_v43 = vrot.slane %v2291_v54, %v2255_v30 }
  0xae   : > { %892 = vperm.xlu0 %2143, %v547_v24   ;;  %v581_v45 = vcombine.low %v572_v20, %v579_v26  ;;  %v588_v46 = vrot.slane %v580_v27, %v2279_v40  ;;  %v614_v39 = vrot.slane %v598_v29, %v2279_v40  ;;  %v346_v47 = vrot.slane %v2291_v54, %v2258_v31 }
  0xaf   : > { %v621_v48 = vrot.slane %v599_v38, %v2279_v40  ;;  %v628_v49 = vrot.slane %v600_v41, %v2279_v40  ;;  %v350_v50 = vrot.slane %v2291_v54, %v2261_v32  ;;  %v354_v51 = vrot.slane %v2291_v54, %v2264_v33 }
  0xb0   : > { %v595_v53 = vrot.slane %v581_v45, %v2279_v40  ;;  %v629_v55 = vcombine.low %v607_v42, %v614_v39  ;;  %v358_v56 = vrot.slane %v2291_v54, %v2267_v34  ;;  %v362_v57 = vrot.slane %v2291_v54, %v2270_v35  ;;  %v1000_v6 = vpop.xlane.xlu1 %999 }
  0xb1   : > { %v630_v58 = vcombine.low %v621_v48, %v628_v49  ;;  %v366_v59 = vrot.slane %v2291_v54, %v2273_v36  ;;  %v370_v60 = vrot.slane %v2291_v54, %v2276_v37  ;;  %v646_v61 = vcombine.low %v342_v43, %v346_v47 }
  0xb2   : > { %v596_v62 = vcombine.low %v588_v46, %v595_v53  ;;  %v637_v63 = vrot.slane %v629_v55, %v2279_v40  ;;  %v647_v0 = vcombine.low %v350_v50, %v354_v51  ;;  %v648_v1 = vcombine.low %v358_v56, %v362_v57 }
  0xb3   : > { %v644_v2 = vrot.slane %v630_v58, %v2279_v40  ;;  %v649_v3 = vcombine.low %v366_v59, %v370_v60  ;;  %v656_v4 = vrot.slane %v646_v61, %v2279_v40  ;;  %v1024_v5 = vrot.slane %v991_v52, %v2255_v30 }
  0xb4   : > { %895 = vperm.xlu1 %2144, %v596_v62   ;;  %v663_v8 = vrot.slane %v647_v0, %v2279_v40  ;;  %v670_v9 = vrot.slane %v648_v1, %v2279_v40  ;;  %v1028_v54 = vrot.slane %v991_v52, %v2258_v31  ;;  %v1032_v10 = vrot.slane %v991_v52, %v2261_v32  ;;  %v1003_v0 = vpop.xlane.xlu1 %1002 }
  0xb5   : > { %v645_v11 = vcombine.low %v637_v63, %v644_v2  ;;  %v677_v12 = vrot.slane %v649_v3, %v2279_v40  ;;  %v1036_v13 = vrot.slane %v991_v52, %v2264_v33  ;;  %v1040_v14 = vrot.slane %v991_v52, %v2267_v34 }
  0xb6   : > { %v678_v15 = vcombine.low %v656_v4, %v663_v8  ;;  %v1044_v16 = vrot.slane %v991_v52, %v2270_v35  ;;  %v1048_v17 = vrot.slane %v991_v52, %v2273_v36  ;;  %v1052_v18 = vrot.slane %v991_v52, %v2276_v37 }
  0xb7   : > { %v679_v19 = vcombine.low %v670_v9, %v677_v12  ;;  %v1277_v20 = vcombine.low %v1024_v5, %v1028_v54  ;;  %v1278_v21 = vcombine.low %v1032_v10, %v1036_v13  ;;  %v1120_v22 = vrot.slane %v1000_v6, %v2255_v30 }
  0xb8   : > { %898 = vperm.xlu1 %2144, %v645_v11   ;;  %v686_v23 = vrot.slane %v678_v15, %v2279_v40  ;;  %v1279_v24 = vcombine.low %v1040_v14, %v1044_v16  ;;  %v1280_v26 = vcombine.low %v1048_v17, %v1052_v18  ;;  %v1124_v27 = vrot.slane %v1000_v6, %v2258_v31 }
  0xb9   : > { %v693_v29 = vrot.slane %v679_v19, %v2279_v40  ;;  %v1287_v38 = vrot.slane %v1277_v20, %v2279_v40  ;;  %v1294_v41 = vrot.slane %v1278_v21, %v2279_v40  ;;  %v1128_v42 = vrot.slane %v1000_v6, %v2261_v32 }
  0xba   : > { %v1301_v43 = vrot.slane %v1279_v24, %v2279_v40  ;;  %v1308_v45 = vrot.slane %v1280_v26, %v2279_v40  ;;  %v1132_v46 = vrot.slane %v1000_v6, %v2264_v33  ;;  %v1136_v39 = vrot.slane %v1000_v6, %v2267_v34  ;;  %v225_v24 = vpop.xlane.xlu0 %224 }
  0xbb   : > { %v694_v47 = vcombine.low %v686_v23, %v693_v29  ;;  %v1309_v48 = vcombine.low %v1287_v38, %v1294_v41  ;;  %v1140_v49 = vrot.slane %v1000_v6, %v2270_v35  ;;  %v1144_v50 = vrot.slane %v1000_v6, %v2273_v36 }
  0xbc   : > { %v1310_v51 = vcombine.low %v1301_v43, %v1308_v45  ;;  %v1148_v52 = vrot.slane %v1000_v6, %v2276_v37  ;;  %v1424_v53 = vcombine.low %v1120_v22, %v1124_v27  ;;  %v1425_v55 = vcombine.low %v1128_v42, %v1132_v46 }
  0xbd   : > { %901 = vperm.xlu1 %2144, %v694_v47   ;;  %v1317_v56 = vrot.slane %v1309_v48, %v2279_v40  ;;  %v1426_v57 = vcombine.low %v1136_v39, %v1140_v49  ;;  %v1056_v58 = vrot.slane %v2306_v7, %v2255_v30  ;;  %v1060_v59 = vrot.slane %v2306_v7, %v2258_v31 }
  0xbe   : > { %v1324_v60 = vrot.slane %v1310_v51, %v2279_v40  ;;  %v1427_v61 = vcombine.low %v1144_v50, %v1148_v52  ;;  %v1434_v62 = vrot.slane %v1424_v53, %v2279_v40  ;;  %v1441_v63 = vrot.slane %v1425_v55, %v2279_v40 }
  0xbf   : > { %v1448_v1 = vrot.slane %v1426_v57, %v2279_v40  ;;  %v1064_v2 = vrot.slane %v2306_v7, %v2261_v32  ;;  %v1068_v3 = vrot.slane %v2306_v7, %v2264_v33  ;;  %v1072_v4 = vrot.slane %v2306_v7, %v2267_v34 }
  0xc0   : > { %v1325_v5 = vcombine.low %v1317_v56, %v1324_v60  ;;  %v1455_v6 = vrot.slane %v1427_v61, %v2279_v40  ;;  %v1456_v8 = vcombine.low %v1434_v62, %v1441_v63  ;;  %v1076_v9 = vrot.slane %v2306_v7, %v2270_v35 }
  0xc1   : > { %v1080_v54 = vrot.slane %v2306_v7, %v2273_v36  ;;  %v1084_v10 = vrot.slane %v2306_v7, %v2276_v37  ;;  %v1326_v11 = vcombine.low %v1056_v58, %v1060_v59  ;;  %v1327_v12 = vcombine.low %v1064_v2, %v1068_v3  ;;  %v1006_v58 = vpop.xlane.xlu1 %1005 }
  0xc2   : > { %1670 = vperm.xlu1 %2144, %v1325_v5   ;;  %v1457_v13 = vcombine.low %v1448_v1, %v1455_v6  ;;  %v1464_v14 = vrot.slane %v1456_v8, %v2279_v40  ;;  %v1328_v15 = vcombine.low %v1072_v4, %v1076_v9  ;;  %v1152_v16 = vrot.slane %v1003_v0, %v2255_v30 }
  0xc3   : > { %v1329_v17 = vcombine.low %v1080_v54, %v1084_v10  ;;  %v1336_v18 = vrot.slane %v1326_v11, %v2279_v40  ;;  %v1343_v19 = vrot.slane %v1327_v12, %v2279_v40  ;;  %v1156_v20 = vrot.slane %v1003_v0, %v2258_v31 }
  0xc4   : > { %v1471_v21 = vrot.slane %v1457_v13, %v2279_v40  ;;  %v1350_v7 = vrot.slane %v1328_v15, %v2279_v40  ;;  %v1160_v22 = vrot.slane %v1003_v0, %v2261_v32  ;;  %v1164_v23 = vrot.slane %v1003_v0, %v2264_v33 }
  0xc5   : > { %v1357_v26 = vrot.slane %v1329_v17, %v2279_v40  ;;  %v1358_v27 = vcombine.low %v1336_v18, %v1343_v19  ;;  %v1168_v29 = vrot.slane %v1003_v0, %v2267_v34  ;;  %v1172_v38 = vrot.slane %v1003_v0, %v2270_v35 }
  0xc6   : > { %v1472_v41 = vcombine.low %v1464_v14, %v1471_v21  ;;  %v1176_v42 = vrot.slane %v1003_v0, %v2273_v36  ;;  %v1180_v43 = vrot.slane %v1003_v0, %v2276_v37  ;;  %v1473_v45 = vcombine.low %v1152_v16, %v1156_v20 }
  0xc7   : > { %v1359_v46 = vcombine.low %v1350_v7, %v1357_v26  ;;  %v1366_v39 = vrot.slane %v1358_v27, %v2279_v40  ;;  %v1474_v47 = vcombine.low %v1160_v22, %v1164_v23  ;;  %v1475_v48 = vcombine.low %v1168_v29, %v1172_v38 }
  0xc8   : > { %1679 = vperm.xlu0 %2143, %v1472_v41   ;;  %v1476_v49 = vcombine.low %v1176_v42, %v1180_v43  ;;  %v1483_v50 = vrot.slane %v1473_v45, %v2279_v40  ;;  %v374_v51 = vrot.slane %v225_v24, %v2255_v30  ;;  %v378_v52 = vrot.slane %v225_v24, %v2258_v31 }
  0xc9   : > { %v1373_v53 = vrot.slane %v1359_v46, %v2279_v40  ;;  %v1490_v55 = vrot.slane %v1474_v47, %v2279_v40  ;;  %v1497_v56 = vrot.slane %v1475_v48, %v2279_v40  ;;  %v382_v57 = vrot.slane %v225_v24, %v2261_v32 }
  0xca   : > { %v1504_v59 = vrot.slane %v1476_v49, %v2279_v40  ;;  %v386_v60 = vrot.slane %v225_v24, %v2264_v33  ;;  %v390_v61 = vrot.slane %v225_v24, %v2267_v34  ;;  %v394_v62 = vrot.slane %v225_v24, %v2270_v35 }
  0xcb   : > { %v1374_v63 = vcombine.low %v1366_v39, %v1373_v53  ;;  %v1505_v0 = vcombine.low %v1483_v50, %v1490_v55  ;;  %v398_v1 = vrot.slane %v225_v24, %v2273_v36  ;;  %v402_v2 = vrot.slane %v225_v24, %v2276_v37  ;;  %v1012_v39 = vpop.xlane.xlu1 %1011 }
  0xcc   : > { %v1506_v3 = vcombine.low %v1497_v56, %v1504_v59  ;;  %v695_v4 = vcombine.low %v374_v51, %v378_v52  ;;  %v696_v5 = vcombine.low %v382_v57, %v386_v60  ;;  %v697_v6 = vcombine.low %v390_v61, %v394_v62  ;;  %v228_v60 = vpop.xlane.xlu0 %227 }
  0xcd   : > { %1673 = vperm.xlu1 %2144, %v1374_v63   ;;  %v1513_v8 = vrot.slane %v1505_v0, %v2279_v40  ;;  %v698_v9 = vcombine.low %v398_v1, %v402_v2  ;;  %v1184_v54 = vrot.slane %v1006_v58, %v2255_v30  ;;  %v1188_v10 = vrot.slane %v1006_v58, %v2258_v31 }
  0xce   : > { %v1520_v11 = vrot.slane %v1506_v3, %v2279_v40  ;;  %v705_v12 = vrot.slane %v695_v4, %v2279_v40  ;;  %v712_v13 = vrot.slane %v696_v5, %v2279_v40  ;;  %v719_v14 = vrot.slane %v697_v6, %v2279_v40 }
  0xcf   : > { %v726_v15 = vrot.slane %v698_v9, %v2279_v40  ;;  %v1192_v16 = vrot.slane %v1006_v58, %v2261_v32  ;;  %v1196_v17 = vrot.slane %v1006_v58, %v2264_v33  ;;  %v1200_v18 = vrot.slane %v1006_v58, %v2267_v34 }
  0xd0   : > { %v1521_v19 = vcombine.low %v1513_v8, %v1520_v11  ;;  %v727_v20 = vcombine.low %v705_v12, %v712_v13  ;;  %v1204_v21 = vrot.slane %v1006_v58, %v2270_v35  ;;  %v1208_v7 = vrot.slane %v1006_v58, %v2273_v36 }
  0xd1   : > { %v728_v22 = vcombine.low %v719_v14, %v726_v15  ;;  %v1212_v23 = vrot.slane %v1006_v58, %v2276_v37  ;;  %v1522_v24 = vcombine.low %v1184_v54, %v1188_v10  ;;  %v1523_v26 = vcombine.low %v1192_v16, %v1196_v17 }
  0xd2   : > { %1682 = vperm.xlu0 %2143, %v1521_v19   ;;  %v735_v27 = vrot.slane %v727_v20, %v2279_v40  ;;  %v1524_v29 = vcombine.low %v1200_v18, %v1204_v21  ;;  %v1088_v38 = vrot.slane %v2322_v44, %v2255_v30  ;;  %v1092_v41 = vrot.slane %v2322_v44, %v2258_v31  ;;  %v231_v20 = vpop.xlane.xlu0 %230 }
  0xd3   : > { %v742_v42 = vrot.slane %v728_v22, %v2279_v40  ;;  %v1525_v43 = vcombine.low %v1208_v7, %v1212_v23  ;;  %v1532_v45 = vrot.slane %v1522_v24, %v2279_v40  ;;  %v1539_v46 = vrot.slane %v1523_v26, %v2279_v40 }
  0xd4   : > { %v1546_v47 = vrot.slane %v1524_v29, %v2279_v40  ;;  %v1096_v48 = vrot.slane %v2322_v44, %v2261_v32  ;;  %v1100_v49 = vrot.slane %v2322_v44, %v2264_v33  ;;  %v1104_v50 = vrot.slane %v2322_v44, %v2267_v34 }
  0xd5   : > { %v743_v51 = vcombine.low %v735_v27, %v742_v42  ;;  %v1553_v52 = vrot.slane %v1525_v43, %v2279_v40  ;;  %v1554_v53 = vcombine.low %v1532_v45, %v1539_v46  ;;  %v1108_v55 = vrot.slane %v2322_v44, %v2270_v35 }
  0xd6   : > { %v1112_v56 = vrot.slane %v2322_v44, %v2273_v36  ;;  %v1116_v57 = vrot.slane %v2322_v44, %v2276_v37  ;;  %v1375_v58 = vcombine.low %v1088_v38, %v1092_v41  ;;  %v1376_v59 = vcombine.low %v1096_v48, %v1100_v49 }
  0xd7   : > { %904 = vperm.xlu1 %2144, %v743_v51   ;;  %v1555_v61 = vcombine.low %v1546_v47, %v1553_v52  ;;  %v1562_v62 = vrot.slane %v1554_v53, %v2279_v40  ;;  %v1377_v63 = vcombine.low %v1104_v50, %v1108_v55  ;;  %v1248_v0 = vrot.slane %v1012_v39, %v2255_v30 }
  0xd8   : > { %v1378_v1 = vcombine.low %v1112_v56, %v1116_v57  ;;  %v1385_v2 = vrot.slane %v1375_v58, %v2279_v40  ;;  %v1392_v3 = vrot.slane %v1376_v59, %v2279_v40  ;;  %v1252_v4 = vrot.slane %v1012_v39, %v2258_v31  ;;  %v234_v57 = vpop.xlane.xlu0 %233 }
  0xd9   : > { %v1569_v5 = vrot.slane %v1555_v61, %v2279_v40  ;;  %v1399_v44 = vrot.slane %v1377_v63, %v2279_v40  ;;  %v1256_v6 = vrot.slane %v1012_v39, %v2261_v32  ;;  %v1260_v8 = vrot.slane %v1012_v39, %v2264_v33 }
  0xda   : > { %v1406_v9 = vrot.slane %v1378_v1, %v2279_v40  ;;  %v1407_v54 = vcombine.low %v1385_v2, %v1392_v3  ;;  %v1264_v10 = vrot.slane %v1012_v39, %v2267_v34  ;;  %v1268_v11 = vrot.slane %v1012_v39, %v2270_v35 }
  0xdb   : > { %v1570_v12 = vcombine.low %v1562_v62, %v1569_v5  ;;  %v1272_v13 = vrot.slane %v1012_v39, %v2273_v36  ;;  %v1276_v14 = vrot.slane %v1012_v39, %v2276_v37  ;;  %v1620_v15 = vcombine.low %v1248_v0, %v1252_v4 }
  0xdc   : > { %v1408_v16 = vcombine.low %v1399_v44, %v1406_v9  ;;  %v1415_v17 = vrot.slane %v1407_v54, %v2279_v40  ;;  %v1621_v18 = vcombine.low %v1256_v6, %v1260_v8  ;;  %v1622_v19 = vcombine.low %v1264_v10, %v1268_v11 }
  0xdd   : > { %1685 = vperm.xlu0 %2143, %v1570_v12   ;;  %v1623_v21 = vcombine.low %v1272_v13, %v1276_v14  ;;  %v1630_v7 = vrot.slane %v1620_v15, %v2279_v40  ;;  %v406_v22 = vrot.slane %v228_v60, %v2255_v30  ;;  %v410_v23 = vrot.slane %v228_v60, %v2258_v31 }
  0xde   : > { %v1422_v24 = vrot.slane %v1408_v16, %v2279_v40  ;;  %v1637_v26 = vrot.slane %v1621_v18, %v2279_v40  ;;  %v1644_v27 = vrot.slane %v1622_v19, %v2279_v40  ;;  %v414_v29 = vrot.slane %v228_v60, %v2261_v32 }
  0xdf   : > { %v1651_v38 = vrot.slane %v1623_v21, %v2279_v40  ;;  %v418_v41 = vrot.slane %v228_v60, %v2264_v33  ;;  %v422_v42 = vrot.slane %v228_v60, %v2267_v34  ;;  %v426_v43 = vrot.slane %v228_v60, %v2270_v35 }
  0xe0   : > { %v1423_v45 = vcombine.low %v1415_v17, %v1422_v24  ;;  %v1652_v46 = vcombine.low %v1630_v7, %v1637_v26  ;;  %v430_v39 = vrot.slane %v228_v60, %v2273_v36  ;;  %v434_v47 = vrot.slane %v228_v60, %v2276_v37  ;;  %v1009_v17 = vpop.xlane.xlu0 %1008 }
  0xe1   : > { %v1653_v48 = vcombine.low %v1644_v27, %v1651_v38  ;;  %v744_v49 = vcombine.low %v406_v22, %v410_v23  ;;  %v745_v50 = vcombine.low %v414_v29, %v418_v41  ;;  %v746_v51 = vcombine.low %v422_v42, %v426_v43 }
  0xe2   : > { %1676 = vperm.xlu1 %2144, %v1423_v45   ;;  %v1660_v52 = vrot.slane %v1652_v46, %v2279_v40  ;;  %v747_v53 = vcombine.low %v430_v39, %v434_v47  ;;  %v438_v55 = vrot.slane %v231_v20, %v2255_v30  ;;  %v442_v56 = vrot.slane %v231_v20, %v2258_v31 }
  0xe3   : > { %v1667_v58 = vrot.slane %v1653_v48, %v2279_v40  ;;  %v754_v59 = vrot.slane %v744_v49, %v2279_v40  ;;  %v761_v61 = vrot.slane %v745_v50, %v2279_v40  ;;  %v768_v60 = vrot.slane %v746_v51, %v2279_v40 }
  0xe4   : > { %v775_v62 = vrot.slane %v747_v53, %v2279_v40  ;;  %v446_v63 = vrot.slane %v231_v20, %v2261_v32  ;;  %v450_v0 = vrot.slane %v231_v20, %v2264_v33  ;;  %v454_v1 = vrot.slane %v231_v20, %v2267_v34 }
  0xe5   : > { %v1668_v2 = vcombine.low %v1660_v52, %v1667_v58  ;;  %v776_v3 = vcombine.low %v754_v59, %v761_v61  ;;  %v458_v4 = vrot.slane %v231_v20, %v2270_v35  ;;  %v462_v5 = vrot.slane %v231_v20, %v2273_v36 }
  0xe6   : > { %v777_v44 = vcombine.low %v768_v60, %v775_v62  ;;  %v466_v6 = vrot.slane %v231_v20, %v2276_v37  ;;  %v793_v8 = vcombine.low %v438_v55, %v442_v56  ;;  %v794_v9 = vcombine.low %v446_v63, %v450_v0 }
  0xe7   : > { %1691 = vperm.xlu0 %2143, %v1668_v2   ;;  %v784_v54 = vrot.slane %v776_v3, %v2279_v40  ;;  %v795_v10 = vcombine.low %v454_v1, %v458_v4  ;;  %v470_v11 = vrot.slane %v234_v57, %v2255_v30  ;;  %v474_v12 = vrot.slane %v234_v57, %v2258_v31 }
  0xe8   : > { %v791_v13 = vrot.slane %v777_v44, %v2279_v40  ;;  %v796_v14 = vcombine.low %v462_v5, %v466_v6  ;;  %v803_v15 = vrot.slane %v793_v8, %v2279_v40  ;;  %v810_v16 = vrot.slane %v794_v9, %v2279_v40  ;;  %v1763_v9 = vld [vmem:[%s2617_s1] sm:$0xff] }
  0xe9   : > { %v817_v18 = vrot.slane %v795_v10, %v2279_v40  ;;  %v478_v19 = vrot.slane %v234_v57, %v2261_v32  ;;  %v482_v20 = vrot.slane %v234_v57, %v2264_v33  ;;  %v486_v21 = vrot.slane %v234_v57, %v2267_v34 }
  0xea   : > { %v792_v7 = vcombine.low %v784_v54, %v791_v13  ;;  %v824_v22 = vrot.slane %v796_v14, %v2279_v40  ;;  %v825_v23 = vcombine.low %v803_v15, %v810_v16  ;;  %v490_v24 = vrot.slane %v234_v57, %v2270_v35  ;;  %v1764_v54 = vld [vmem:[%s2617_s1 + $0x8] sm:$0xff]  ;;  %v1766_v13 = vld [vmem:[%s2617_s1 + $0x18] sm:$0xff]  ;;  %v1767_v15 = vld [vmem:[%s2617_s1 + $0x20] sm:$0xff] }
  0xeb   : > { %v494_v26 = vrot.slane %v234_v57, %v2273_v36  ;;  %v498_v27 = vrot.slane %v234_v57, %v2276_v37  ;;  %v842_v29 = vcombine.low %v470_v11, %v474_v12  ;;  %v843_v38 = vcombine.low %v478_v19, %v482_v20  ;;  %v1765_v12 = vld [vmem:[%s2617_s1 + $0x10] sm:$0xff]  ;;  %v1768_v16 = vld [vmem:[%s2617_s1 + $0x28] sm:$0xff]  ;;  %v1770_v19 = vld [vmem:[%s2617_s1 + $0x38] sm:$0xff] }
  0xec   : > { %907 = vperm.xlu1 %2144, %v792_v7   ;;  %v826_v41 = vcombine.low %v817_v18, %v824_v22  ;;  %v833_v42 = vrot.slane %v825_v23, %v2279_v40  ;;  %v844_v43 = vcombine.low %v486_v21, %v490_v24  ;;  %v1216_v45 = vrot.slane %v1009_v17, %v2255_v30  ;;  %v1769_v18 = vld [vmem:[%s2617_s1 + $0x30] sm:$0xff] }
  0xed   : > { %v845_v46 = vcombine.low %v494_v26, %v498_v27  ;;  %v852_v39 = vrot.slane %v842_v29, %v2279_v40  ;;  %v859_v47 = vrot.slane %v843_v38, %v2279_v40  ;;  %v1220_v48 = vrot.slane %v1009_v17, %v2258_v31 }
  0xee   : > { %v840_v49 = vrot.slane %v826_v41, %v2279_v40  ;;  %v866_v50 = vrot.slane %v844_v43, %v2279_v40  ;;  %v1224_v51 = vrot.slane %v1009_v17, %v2261_v32  ;;  %v1228_v52 = vrot.slane %v1009_v17, %v2264_v33 }
  0xef   : > { %v873_v53 = vrot.slane %v845_v46, %v2279_v40  ;;  %v874_v55 = vcombine.low %v852_v39, %v859_v47  ;;  %v1232_v56 = vrot.slane %v1009_v17, %v2267_v34  ;;  %v1236_v57 = vrot.slane %v1009_v17, %v2270_v35 }
  0xf0   : > { %v841_v58 = vcombine.low %v833_v42, %v840_v49  ;;  %v1240_v59 = vrot.slane %v1009_v17, %v2273_v36  ;;  %v1244_v31 = vrot.slane %v1009_v17, %v2276_v37  ;;  %v1571_v61 = vcombine.low %v1216_v45, %v1220_v48 }
  0xf1   : > { %v875_v60 = vcombine.low %v866_v50, %v873_v53  ;;  %v882_v62 = vrot.slane %v874_v55, %v2279_v40  ;;  %v1572_v63 = vcombine.low %v1224_v51, %v1228_v52  ;;  %v1573_v32 = vcombine.low %v1232_v56, %v1236_v57 }
  0xf2   : > { %910 = vperm.xlu1 %2144, %v841_v58   ;;  %v1574_v33 = vcombine.low %v1240_v59, %v1244_v31  ;;  %v1581_v0 = vrot.slane %v1571_v61, %v2279_v40  ;;  %v2175_v6 = vmov 0.0   ;;  %v2176_v8 = vmov -inf  }
  0xf3   : > { %v889_v1 = vrot.slane %v875_v60, %v2279_v40  ;;  %v1588_v34 = vrot.slane %v1572_v63, %v2279_v40  ;;  %v1595_v35 = vrot.slane %v1573_v32, %v2279_v40  ;;  %199 = vst.msk [vmem:[#allocation2] sm:$0x1] %vm198_vm1, %v2175_v6  ;;  %2096 = vmatprep.subr.mxu1 %v2175_v6  ;;  %200 = vst.msk [vmem:[#allocation3] sm:$0x1] %vm198_vm1, %v2176_v8  ;;  %v2177_v11 = vmov 0.0|0.0  }
  0xf4   : > { %v1602_v36 = vrot.slane %v1574_v33, %v2279_v40  ;;  %v2102_v10 = vpack.c.bf16 %v1764_v54, %v1763_v9  ;;  %2101 = vmatprep.subr.bf16.mxu0 %v2177_v11  ;;  %v2105_v14 = vpack.c.bf16 %v1766_v13, %v1765_v12  ;;  %2093 = vmatprep.mubr.msk.f32.mxu0 %vm2178_vm2, %v2175_v6  ;;  %v916_v29 = vand.u32 127, %v243_v25 }
  0xf5   : > { %v890_v2 = vcombine.low %v882_v62, %v889_v1  ;;  %v1603_v37 = vcombine.low %v1581_v0, %v1588_v34  ;;  %2098 = vmatprep.mubr.msk.f32.mxu1 %vm2178_vm2, %v2175_v6  ;;  %v2108_v17 = vpack.c.bf16 %v1768_v16, %v1767_v15  ;;  %v2111_v20 = vpack.c.bf16 %v1770_v19, %v1769_v18 }
  0xf6   : > { %v1604_v3 = vcombine.low %v1595_v35, %v1602_v36  ;;  %2103 = vmatpush3.bf16.msra.mxu0 %v2102_v10  ;;  %v921_v41 = vadd.s32 4294967288, %v916_v29  ;;  %v928_v42 = vadd.s32 4294967280, %v916_v29  ;;  %v935_v45 = vadd.s32 4294967272, %v916_v29 }
  0xf7   : > { %913 = vperm.xlu1 %2144, %v890_v2   ;;  %v1611_v4 = vrot.slane %v1603_v37, %v2279_v40  ;;  %2104 = vmatprep.subr.bf16.mxu0 %v2177_v11  ;;  %v942_v46 = vadd.s32 4294967264, %v916_v29  ;;  %v956_v49 = vadd.s32 4294967248, %v916_v29  ;;  %v919_v50 = vsub.s32 %v916_v29, %v2252_v28 }
  0xf8   : > { %v1618_v5 = vrot.slane %v1604_v3, %v2279_v40  ;;  %v924_v39 = vsub.s32 %v921_v41, %v2252_v28  ;;  %v931_v48 = vsub.s32 %v928_v42, %v2252_v28  ;;  %v938_v51 = vsub.s32 %v935_v45, %v2252_v28  ;;  %v1771_v45 = vld [vmem:[%s2618_s2] sm:$0xf] }
  0xf9   : > { %v949_v52 = vadd.s32 4294967256, %v916_v29  ;;  %v945_v53 = vsub.s32 %v942_v46, %v2252_v28  ;;  %v963_v59 = vadd.s32 4294967240, %v916_v29  ;;  %v959_v31 = vsub.s32 %v956_v49, %v2252_v28  ;;  %2097 = vmatpush3.msk.msra.mxu1 %vm1851_vm12, %v1771_v45 }
  0xfa   : > { %v1619_v44 = vcombine.low %v1611_v4, %v1618_v5  ;;  %2106 = vmatpush3.bf16.msra.mxu0 %v2105_v14 }
  0xfb   : > { %2107 = vmatprep.subr.bf16.mxu0 %v2177_v11  ;;  %v952_v63 = vsub.s32 %v949_v52, %v2252_v28  ;;  %v966_v5 = vsub.s32 %v963_v59, %v2252_v28 }
  0xfc   : > { %1688 = vperm.xlu1 %2144, %v1619_v44  }
  0xfe   : > { %2109 = vmatpush3.bf16.msra.mxu0 %v2108_v17  ;;  %v209_v17 = vld [vmem:[#allocation2] sm:$0x1] }
  0xff   : > { %2110 = vmatprep.subr.bf16.mxu0 %v2177_v11 }
 0x102   : > { %2112 = vmatpush3.bf16.msra.mxu0 %v2111_v20 }
 0x12d   : > { %v893_v27 = vpop.permute.xlu0 %892 }
 0x12e   : > { %v920_v61 = vrot.slane %v893_v27, %v919_v50 }
 0x133   : > { %v896_v21 = vpop.permute.xlu1 %895 }
 0x134   : > { %v925_v55 = vrot.slane %v896_v21, %v924_v39 }
 0x136   : > { %v927_v0 = vsel %vm926_vm3, %v925_v55, %v920_v61 }
 0x137   : > { %v899_v7 = vpop.permute.xlu1 %898 }
 0x138   : > { %v932_v57 = vrot.slane %v899_v7, %v931_v48 }
 0x13a   : > { %v934_v36 = vsel %vm933_vm4, %v932_v57, %v927_v0 }
 0x13c   : > { %v902_v22 = vpop.permute.xlu1 %901 }
 0x13d   : > { %v939_v60 = vrot.slane %v902_v22, %v938_v51 }
 0x13f   : > { %v941_v4 = vsel %vm940_vm5, %v939_v60, %v934_v36 }
 0x141   : > { %v1671_v23 = vpop.permute.xlu1 %1670 }
 0x142   : > { %v1696_v62 = vrot.slane %v1671_v23, %v919_v50 }
 0x147   : > { %v1680_v43 = vpop.permute.xlu0 %1679 }
 0x148   : > { %v1710_v1 = vrot.slane %v1680_v43, %v938_v51 }
 0x14c   : > { %v1674_v24 = vpop.permute.xlu1 %1673 }
 0x14d   : > { %v1700_v56 = vrot.slane %v1674_v24, %v924_v39 }
 0x14f   : > { %v1701_v34 = vsel %vm926_vm3, %v1700_v56, %v1696_v62 }
 0x151   : > { %v1683_v25 = vpop.permute.xlu0 %1682 }
 0x152   : > { %v1715_v44 = vrot.slane %v1683_v25, %v945_v53 }
 0x156   : > { %v905_v26 = vpop.permute.xlu1 %904 }
 0x157   : > { %v946_v33 = vrot.slane %v905_v26, %v945_v53  ;;  %v988_v26 = vld [vmem:[#allocation3] sm:$0x1] }
 0x159   : > { %v948_v6 = vsel %vm947_vm6, %v946_v33, %v941_v4 }
 0x15c   : > { %v1686_v2 = vpop.permute.xlu0 %1685 }
 0x15d   : > { %v1720_v15 = vrot.slane %v1686_v2, %v952_v63 }
 0x161   : > { %v1677_v38 = vpop.permute.xlu1 %1676 }
 0x162   : > { %v1705_v58 = vrot.slane %v1677_v38, %v931_v48 }
 0x164   : > { %v1706_v37 = vsel %vm933_vm4, %v1705_v58, %v1701_v34 }
 0x165   : > { %v1711_v9 = vsel %vm940_vm5, %v1710_v1, %v1706_v37 }
 0x166   : > { %v1692_v13 = vpop.permute.xlu0 %1691  ;;  %v1716_v28 = vsel %vm947_vm6, %v1715_v44, %v1711_v9 }
 0x167   : > { %v1730_v20 = vrot.slane %v1692_v13, %v966_v5  ;;  %v1721_v21 = vsel %vm954_vm7, %v1720_v15, %v1716_v28 }
 0x16b   : > { %v908_v47 = vpop.permute.xlu1 %907 }
 0x16c   : > { %v953_v35 = vrot.slane %v908_v47, %v952_v63 }
 0x16e   : > { %v955_v54 = vsel %vm954_vm7, %v953_v35, %v948_v6 }
 0x171   : > { %v911_v32 = vpop.permute.xlu1 %910 }
 0x172   : > { %v960_v3 = vrot.slane %v911_v32, %v959_v31 }
 0x174   : > { %v962_v11 = vsel %vm961_vm8, %v960_v3, %v955_v54 }
 0x176   : > { %v914_v8 = vpop.permute.xlu1 %913 }
 0x177   : > { %v967_v10 = vrot.slane %v914_v8, %v966_v5 }
 0x179   : > { %v969_v12 = vsel %vm968_vm9, %v967_v10, %v962_v11 }
 0x17a   : > { %v976_v14 = vrot.slane %v969_v12, %v2279_v40 }
 0x17b   : > { %v1689_v16 = vpop.permute.xlu1 %1688 }
 0x17c   : > { %v983_v18 = vrot.slane %v976_v14, %v2279_v40  ;;  %v1725_v19 = vrot.slane %v1689_v16, %v959_v31 }
 0x17e   : > { %v1726_v7 = vsel %vm961_vm8, %v1725_v19, %v1721_v21  ;;  %v985_v22 = vadd.f32 %v983_v18, %v209_v17 }
 0x17f   : > { %v1731_v23 = vsel %vm968_vm9, %v1730_v20, %v1726_v7 }
 0x180   : > { %v1738_v24 = vrot.slane %v1731_v23, %v2279_v40  ;;  %987 = vst.msk [vmem:[#allocation2] sm:$0x1] %vm198_vm1, %v985_v22 }
 0x182   : > { %v1745_v27 = vrot.slane %v1738_v24, %v2279_v40 }
 0x184   : > { %v1747_v29 = vmax.f32 %v988_v26, %v1745_v27 }
 0x186   : > { %1748 = vst.msk [vmem:[#allocation3] sm:$0x1] %vm198_vm1, %v1747_v29 }
 0x187   : > { %v1752_v38 = vld [vmem:[#allocation2] sm:$0x1] }
 0x188   : > { %v1753_v41 = vmul.f32 0.0625, %v1752_v38 }
 0x18d   : > { %v2057_v42 = vld [vmem:[#allocation3] ss:$0 sm:$0xff] }
 0x18e   : > { %v1762_v43 = vsel %vm1761_vm10, %v1753_v41, %v2057_v42 }
 0x18f   : > { %2094 = vmatmul.mubr.msk.f32.vlgmr.msra.gmra.mrb[0].mxu0 %vm1772_vm11, %v1762_v43 }
 0x262   : > { %v1842_v46 = vpop.f32.mrb[0].mxu0 }
 0x263   : > { %v1846_v39 = vmax.f32 %v1842_v46, 0.0  ;;  %v2095_v40 = vpop.f32.mrb[1].mxu0 }
 0x265   : > { %2099 = vmatmul.mubr.msk.f32.vlgmr.msra.gmra.mrb[0].mxu1 %vm1847_vm13, %v1846_v39 }
 0x338   : > { %v1921_v47 = vpop.f32.mrb[0].mxu1 }
 0x339   : > { %v1926_v48 = vrot.slane %v1921_v47, 1  ;;  %v2100_v49 = vpop.f32.mrb[1].mxu1 }
 0x33b   : > { %v1928_v50 = vadd.f32 %v1926_v48, %v1921_v47 }
 0x33d   : > { %v2061_v51 = vmul.f32 -1.442695, %v1928_v50 }
 0x33f   : > { %2145 = vpow2.f32 %v2061_v51 }
 0x349   : > { %v2146_v52 = vpop.eup %2145 }
 0x34a   : > { %v1932_v53 = vadd.f32 1.0, %v2146_v52 }
 0x34c   : > { %2147 = vrcp.f32 %v1932_v53 }
 0x356   : > { %v2148_v25 = vpop.eup %2147 }
 0x357   : > { %v1938_v55 = vrot.slane %v2148_v25, %v2255_v30 }
 0x359   : > { %1944 = vbcast.lane.b32.xlu0 %v1938_v55, 264  ;;  %1940 = vbcast.lane.b32.xlu1 %v1938_v55, 256 }
 0x35d   : > { %1952 = vbcast.lane.b32.xlu0 %v1938_v55, 280  ;;  %1948 = vbcast.lane.b32.xlu1 %v1938_v55, 272 }
 0x361   : > { %1960 = vbcast.lane.b32.xlu0 %v1938_v55, 296  ;;  %1956 = vbcast.lane.b32.xlu1 %v1938_v55, 288 }
 0x365   : > { %1968 = vbcast.lane.b32.xlu0 %v1938_v55, 312  ;;  %1964 = vbcast.lane.b32.xlu1 %v1938_v55, 304 }
 0x3cb   : > { %v1945_v56 = vpop.permute.xlu0 %1944  ;;  %v1941_v57 = vpop.permute.xlu1 %1940 }
 0x3cc   : > { %1972 = vst.msk [vmem:[%s193_s18 + $0x8] sm:$0xff] %vm1970_vm14, %v1945_v56  ;;  %1971 = vst.msk [vmem:[%s193_s18] sm:$0xff] %vm1970_vm14, %v1941_v57 }
 0x3cf   : > { %v1953_v30 = vpop.permute.xlu0 %1952  ;;  %v1949_v58 = vpop.permute.xlu1 %1948 }
 0x3d0   : > { %1974 = vst.msk [vmem:[%s193_s18 + $0x18] sm:$0xff] %vm1970_vm14, %v1953_v30  ;;  %1973 = vst.msk [vmem:[%s193_s18 + $0x10] sm:$0xff] %vm1970_vm14, %v1949_v58 }
 0x3d3   : > { %v1961_v59 = vpop.permute.xlu0 %1960  ;;  %v1957_v31 = vpop.permute.xlu1 %1956 }
 0x3d4   : > { %1976 = vst.msk [vmem:[%s193_s18 + $0x28] sm:$0xff] %vm1970_vm14, %v1961_v59  ;;  %1975 = vst.msk [vmem:[%s193_s18 + $0x20] sm:$0xff] %vm1970_vm14, %v1957_v31 }
 0x3d7   : > { %v1969_v61 = vpop.permute.xlu0 %1968  ;;  %v1965_v60 = vpop.permute.xlu1 %1964 }
 0x3d8   : > { %1978 = vst.msk [vmem:[%s193_s18 + $0x38] sm:$0xff] %vm1970_vm14, %v1969_v61  ;;  %1977 = vst.msk [vmem:[%s193_s18 + $0x30] sm:$0xff] %vm1970_vm14, %v1965_v60 }
 0x3d9 PF: > { %s13_s14 = sadd.s32 1, %s2171_s14   ;;  %s2620_s12 = smov %s2167_s13 }
 0x3da   : > { %p10_p5 = scmp.ge.s32.totalorder %s13_s14, 4   ;;  %s2621_s13 = smov %s2623_s15 }
 0x3dc   :  { %12 = sbr.rel (!%p10_p5) target bundleno = 2 (0x2), region = 70 }

</bundles_post_ra>
